<compile_context>
chip_gen: v6e
topology: v6e:2x2x1
jax: 0.10.0
libtpu: 0.0.40
codegen_flags: <defaults>
</compile_context>

<pallas_src>
import jax
import jax.numpy as jnp
from jax.experimental import pallas as pl
from jax.experimental.pallas import tpu as pltpu

# ----------------------------------------------------------------------------
# Module configuration (arguments that would be passed to ConvOutputLayer)
# ----------------------------------------------------------------------------
B = 2                 # batch
H_DIM = 33            # hidden feature size (fc_2_size)
X_DIM = 16            # x feature size
L_Z = H_DIM + X_DIM   # concat length (fc_1_size) = 49
L_Y = H_DIM           # hidden-branch length   = 33

CONV1 = dict(in_channels=1, out_channels=4, kernel_size=3, padding=1)
CONV2 = dict(in_channels=4, out_channels=2, kernel_size=3, padding=1)
MP1 = dict(kernel_size=3, stride=2)
MP2 = dict(kernel_size=2, stride=2)

C1, K1, P1 = CONV1['out_channels'], CONV1['kernel_size'], CONV1['padding']
C2, K2, P2 = CONV2['out_channels'], CONV2['kernel_size'], CONV2['padding']


def get_conv_mp_out_size(in_size, last_channels, mps):
    size = in_size
    for mp in mps:
        size = round((size - mp['kernel_size']) / mp['stride'] + 1)
    return int(size * last_channels)


def _mp_out(length, mp):
    # keep the floor formula everywhere (round() in the torch helper happens to agree here)
    return (length - mp['kernel_size']) // mp['stride'] + 1


L_Z1, L_Y1 = _mp_out(L_Z, MP1), _mp_out(L_Y, MP1)
L_Z2, L_Y2 = _mp_out(L_Z1, MP2), _mp_out(L_Y1, MP2)
FZ = C2 * L_Z2        # fc1 in_features
FY = C2 * L_Y2        # fc2 in_features
assert FZ == get_conv_mp_out_size(L_Z, C2, [MP1, MP2])
assert FY == get_conv_mp_out_size(L_Y, C2, [MP1, MP2])

LANES = 128                       # fixed lane width of every in-kernel value
R = 2 * B                         # stacked rows: concat branch + hidden branch
D1 = MP1['stride']                # lane dilation after mp_1 (pooled j1 lives at lane 2*j1)
STRIDE_OUT = MP1['stride'] * MP2['stride']   # pooled j2 lives at lane 4*j2


# ----------------------------------------------------------------------------
# Kernel helpers: zero-filled lane shifts (static slices + one concat; no wrap,
# so the shifted-in lanes double as the conv zero padding).
# ----------------------------------------------------------------------------
def _shift_left(v, k):
    """result[:, j] = v[:, j + k] for j < W-k, zeros beyond."""
    if k == 0:
        return v
    rows, w = v.shape
    return jnp.concatenate([v[:, k:], jnp.zeros((rows, k), v.dtype)], axis=1)


def _shift_right(v, k):
    """result[:, j] = v[:, j - k] for j >= k, zeros for j < k."""
    if k == 0:
        return v
    rows, w = v.shape
    return jnp.concatenate([jnp.zeros((rows, k), v.dtype), v[:, :w - k]], axis=1)


# ----------------------------------------------------------------------------
# Kernel
# ----------------------------------------------------------------------------
def conv_output_kernel(xin_ref, fcw_ref, w1_ref, b1_ref, w2_ref, b2_ref, fcb_ref,
                       out_ref):
    x = xin_ref[...]                                   # (2B, 128): both branches stacked
    rows, lanes = x.shape

    # ---- conv1d_1 (1 -> C1, k=K1, padding=P1 baked in as a lane offset) + ReLU -------
    xs = [_shift_left(x, k) for k in range(K1)]        # tap shifts shared by all channels
    o1 = []
    for co in range(C1):
        acc = w1_ref[co * K1] * xs[0]
        for k in range(1, K1):
            acc = acc + w1_ref[co * K1 + k] * xs[k]
        o1.append(jnp.maximum(acc + b1_ref[co], 0.0))

    # ---- mp_1 (k=3, s=2): pooled value j1 stays at lane 2*j1.  Lanes >= 2*L?1 are zeroed
    # so they serve directly as conv1d_2's right zero pad (o1 >= 0 after ReLU).
    lane = jax.lax.broadcasted_iota(jnp.int32, (rows, lanes), 1)
    row = jax.lax.broadcasted_iota(jnp.int32, (rows, lanes), 0)
    valid = lane < jnp.where(row < B, 2 * L_Z1, 2 * L_Y1)
    m1 = []
    for co in range(C1):
        mx = jnp.maximum(jnp.maximum(o1[co], _shift_left(o1[co], 1)),
                         _shift_left(o1[co], 2))
        m1.append(jnp.where(valid, mx, 0.0))

    # ---- conv1d_2 (C1 -> C2, k=3, padding=1), lane-dilated by D1; no ReLU -------------
    m1_prev = [_shift_right(m, D1) for m in m1]        # m1[p - D1]  (left zero pad)
    m1_next = [_shift_left(m, D1) for m in m1]         # m1[p + D1]  (right zero pad via mask)
    c2 = []
    for co in range(C2):
        base = co * C1 * K2
        acc = None
        for ci in range(C1):
            t = (w2_ref[base + ci * K2 + 0] * m1_prev[ci]
                 + w2_ref[base + ci * K2 + 1] * m1[ci]
                 + w2_ref[base + ci * K2 + 2] * m1_next[ci])
            acc = t if acc is None else acc + t
        c2.append(acc + b2_ref[co])

    # ---- mp_2 (k=2, s=2) + both FC heads ----------------------------------------------
    # Pooled value j2 sits at lane 4*j2; the FC weights were pre-scattered onto exactly
    # those lanes (zeros elsewhere), so fc1(Z) / fc2(Y) collapse to a multiply plus a
    # single cross-lane reduce shared by both branches.
    prod = None
    for co in range(C2):
        m2 = jnp.maximum(c2[co], _shift_left(c2[co], D1))
        p = m2 * fcw_ref[co]                            # fcw_ref[co]: (2B, 128)
        prod = p if prod is None else prod + p
    s = jnp.sum(prod, axis=1, keepdims=True)            # (2B, 1): the only lane reduce
    r1 = s[0:B] + fcb_ref[0]                            # fc1(Z)  (concat-branch rows)
    r2 = s[B:2 * B] + fcb_ref[1]                        # fc2(Y)  (hidden-branch rows)
    out_ref[...] = jax.nn.sigmoid(r1 * r2)              # (B, 1)


# ----------------------------------------------------------------------------
# Wrapper (layout glue only: padding, branch stacking, parameter re-layout)
# ----------------------------------------------------------------------------
def conv_output_forward(hidden, x, params):
    hidden = hidden.astype(jnp.float32)
    x = x.astype(jnp.float32)
    concat = jnp.concatenate([hidden, x], axis=1)                   # (B, L_Z)

    # Both branches stacked on sublanes; lane-dense (128) zero-padded blocks with the
    # conv1 left zero pad baked in as a lane offset of P1.
    xin = jnp.zeros((R, LANES), jnp.float32)
    xin = xin.at[0:B, P1:P1 + L_Z].set(concat)
    xin = xin.at[B:R, P1:P1 + L_Y].set(hidden)

    # FC weights scattered onto the lanes where the in-place pooled values live:
    # channel c, pooled index j2  ->  lane STRIDE_OUT * j2 (matches torch's .view flatten
    # order c*L2 + j2).
    fcw = jnp.zeros((C2, R, LANES), jnp.float32)
    for c in range(C2):
        wz = params['fc1_w'][0, c * L_Z2:(c + 1) * L_Z2]            # (L_Z2,)
        wy = params['fc2_w'][0, c * L_Y2:(c + 1) * L_Y2]            # (L_Y2,)
        fcw = fcw.at[c, 0:B, 0:STRIDE_OUT * L_Z2:STRIDE_OUT].set(
            jnp.broadcast_to(wz, (B, L_Z2)))
        fcw = fcw.at[c, B:R, 0:STRIDE_OUT * L_Y2:STRIDE_OUT].set(
            jnp.broadcast_to(wy, (B, L_Y2)))

    # Flat 1-D SMEM scalar parameters.
    w1s = params['w1'].reshape(-1).astype(jnp.float32)              # (C1*K1,)
    b1s = params['b1'].reshape(-1).astype(jnp.float32)              # (C1,)
    w2s = params['w2'].reshape(-1).astype(jnp.float32)              # (C2*C1*K2,)
    b2s = params['b2'].reshape(-1).astype(jnp.float32)              # (C2,)
    fcb = jnp.stack([params['fc1_b'].reshape(()),
                     params['fc2_b'].reshape(())]).astype(jnp.float32)  # (2,)

    vmem = pl.BlockSpec(memory_space=pltpu.MemorySpace.VMEM)
    smem = pl.BlockSpec(memory_space=pltpu.MemorySpace.SMEM)
    out = pl.pallas_call(
        conv_output_kernel,
        out_shape=jax.ShapeDtypeStruct((B, 1), jnp.float32),
        in_specs=[vmem, vmem, smem, smem, smem, smem, smem],
        out_specs=vmem,
    )(xin, fcw, w1s, b1s, w2s, b2s, fcb)

    return out.reshape(-1)                                          # torch.flatten


# ----------------------------------------------------------------------------
# Pure-JAX reference (mirrors the PyTorch forward exactly)
# ----------------------------------------------------------------------------
def reference_forward(hidden, x, p):
    def conv1d(inp, w, b, pad):
        out = jax.lax.conv_general_dilated(
            inp, w, window_strides=(1,), padding=[(pad, pad)],
            dimension_numbers=('NCH', 'OIH', 'NCH'))
        return out + b[None, :, None]

    def maxpool(inp, k, s):
        return jax.lax.reduce_window(inp, -jnp.inf, jax.lax.max,
                                     (1, 1, k), (1, 1, s), 'VALID')

    concat = jnp.concatenate([hidden, x], axis=1).reshape(-1, 1, L_Z)
    z = jnp.maximum(conv1d(concat, p['w1_full'], p['b1_vec'], P1), 0.0)
    z = maxpool(z, MP1['kernel_size'], MP1['stride'])
    z = maxpool(conv1d(z, p['w2_full'], p['b2_vec'], P2),
                MP2['kernel_size'], MP2['stride'])

    h = hidden.reshape(-1, 1, L_Y)
    yv = jnp.maximum(conv1d(h, p['w1_full'], p['b1_vec'], P1), 0.0)
    yv = maxpool(yv, MP1['kernel_size'], MP1['stride'])
    yv = maxpool(conv1d(yv, p['w2_full'], p['b2_vec'], P2),
                 MP2['kernel_size'], MP2['stride'])

    zf = z.reshape(B, -1)
    yf = yv.reshape(B, -1)
    r1 = zf @ p['fc1_w'].T + p['fc1_b'][0]
    r2 = yf @ p['fc2_w'].T + p['fc2_b'][0]
    return jax.nn.sigmoid((r1 * r2).reshape(-1))


# ----------------------------------------------------------------------------
# Main
# ----------------------------------------------------------------------------
if __name__ == "__main__":
    key = jax.random.PRNGKey(0)
    ks = jax.random.split(key, 10)

    w1_full = 0.2 * jax.random.normal(ks[0], (C1, 1, K1), jnp.float32)
    b1_vec = 0.1 * jax.random.normal(ks[1], (C1,), jnp.float32)
    w2_full = 0.2 * jax.random.normal(ks[2], (C2, C1, K2), jnp.float32)
    b2_vec = 0.1 * jax.random.normal(ks[3], (C2,), jnp.float32)
    fc1_w = 0.2 * jax.random.normal(ks[4], (1, FZ), jnp.float32)
    fc1_b = 0.1 * jax.random.normal(ks[5], (1, 1), jnp.float32)
    fc2_w = 0.2 * jax.random.normal(ks[6], (1, FY), jnp.float32)
    fc2_b = 0.1 * jax.random.normal(ks[7], (1, 1), jnp.float32)

    params = dict(
        # kernel-side parameter layouts
        w1=w1_full[:, 0, :],                 # (C1, K1)
        b1=b1_vec.reshape(1, C1),            # (1, C1)
        w2=w2_full.reshape(C2, C1 * K2),     # (C2, C1*K2)
        b2=b2_vec.reshape(1, C2),            # (1, C2)
        fc1_w=fc1_w, fc1_b=fc1_b, fc2_w=fc2_w, fc2_b=fc2_b,
        # reference-side layouts
        w1_full=w1_full, b1_vec=b1_vec, w2_full=w2_full, b2_vec=b2_vec,
    )

    hidden = jax.random.normal(ks[8], (B, H_DIM), jnp.float32)
    x = jax.random.normal(ks[9], (B, X_DIM), jnp.float32)

    out = conv_output_forward(hidden, x, params)
    out = jax.block_until_ready(out)

    ref = reference_forward(hidden, x, params)
    assert out.shape == (B,)
    assert jnp.allclose(out, ref, atol=1e-5, rtol=1e-5), (out, ref)

    print("KERNEL_OK")
</pallas_src>

<mosaic_0001>
module attributes {stable_mosaic.version = 11 : i64} {
  func.func @conv_output_kernel(%arg0: memref<4x128xf32, #tpu.memory_space<vmem>>, %arg1: memref<2x4x128xf32, #tpu.memory_space<vmem>>, %arg2: memref<12xf32, #tpu.memory_space<smem>>, %arg3: memref<4xf32, #tpu.memory_space<smem>>, %arg4: memref<24xf32, #tpu.memory_space<smem>>, %arg5: memref<2xf32, #tpu.memory_space<smem>>, %arg6: memref<2xf32, #tpu.memory_space<smem>>, %arg7: memref<2x1xf32, #tpu.memory_space<vmem>>) attributes {dimension_semantics = [], scalar_prefetch = 0 : i64, scratch_operands = 0 : i64, tpu.core_type = #tpu.core_type<tc>} {
    %c0 = arith.constant 0 : index
    %c0_0 = arith.constant 0 : index
    %0 = vector.load %arg0[%c0, %c0_0] : memref<4x128xf32, #tpu.memory_space<vmem>>, vector<4x128xf32>
    %1 = vector.extract_strided_slice %0 {offsets = [0, 1], sizes = [4, 127], strides = [1, 1]} : vector<4x128xf32> to vector<4x127xf32>
    %cst = arith.constant 0.000000e+00 : f32
    %2 = vector.broadcast %cst : f32 to vector<4x1xf32>
    %3 = tpu.concatenate %1, %2 in 1 : vector<4x127xf32>, vector<4x1xf32> -> vector<4x128xf32>
    %4 = vector.extract_strided_slice %0 {offsets = [0, 2], sizes = [4, 126], strides = [1, 1]} : vector<4x128xf32> to vector<4x126xf32>
    %cst_1 = arith.constant 0.000000e+00 : f32
    %5 = vector.broadcast %cst_1 : f32 to vector<4x2xf32>
    %6 = tpu.concatenate %4, %5 in 1 : vector<4x126xf32>, vector<4x2xf32> -> vector<4x128xf32>
    %c0_2 = arith.constant 0 : index
    %7 = memref.load %arg2[%c0_2] : memref<12xf32, #tpu.memory_space<smem>>
    %8 = vector.broadcast %7 : f32 to vector<4x128xf32>
    %9 = arith.mulf %8, %0 : vector<4x128xf32>
    %c1 = arith.constant 1 : index
    %10 = memref.load %arg2[%c1] : memref<12xf32, #tpu.memory_space<smem>>
    %11 = vector.broadcast %10 : f32 to vector<4x128xf32>
    %12 = arith.mulf %11, %3 : vector<4x128xf32>
    %13 = arith.addf %9, %12 : vector<4x128xf32>
    %c2 = arith.constant 2 : index
    %14 = memref.load %arg2[%c2] : memref<12xf32, #tpu.memory_space<smem>>
    %15 = vector.broadcast %14 : f32 to vector<4x128xf32>
    %16 = arith.mulf %15, %6 : vector<4x128xf32>
    %17 = arith.addf %13, %16 : vector<4x128xf32>
    %c0_3 = arith.constant 0 : index
    %18 = memref.load %arg3[%c0_3] : memref<4xf32, #tpu.memory_space<smem>>
    %19 = vector.broadcast %18 : f32 to vector<4x128xf32>
    %20 = arith.addf %17, %19 : vector<4x128xf32>
    %cst_4 = arith.constant 0.000000e+00 : f32
    %21 = vector.broadcast %cst_4 : f32 to vector<4x128xf32>
    %22 = arith.maximumf %20, %21 : vector<4x128xf32>
    %c3 = arith.constant 3 : index
    %23 = memref.load %arg2[%c3] : memref<12xf32, #tpu.memory_space<smem>>
    %24 = vector.broadcast %23 : f32 to vector<4x128xf32>
    %25 = arith.mulf %24, %0 : vector<4x128xf32>
    %c4 = arith.constant 4 : index
    %26 = memref.load %arg2[%c4] : memref<12xf32, #tpu.memory_space<smem>>
    %27 = vector.broadcast %26 : f32 to vector<4x128xf32>
    %28 = arith.mulf %27, %3 : vector<4x128xf32>
    %29 = arith.addf %25, %28 : vector<4x128xf32>
    %c5 = arith.constant 5 : index
    %30 = memref.load %arg2[%c5] : memref<12xf32, #tpu.memory_space<smem>>
    %31 = vector.broadcast %30 : f32 to vector<4x128xf32>
    %32 = arith.mulf %31, %6 : vector<4x128xf32>
    %33 = arith.addf %29, %32 : vector<4x128xf32>
    %c1_5 = arith.constant 1 : index
    %34 = memref.load %arg3[%c1_5] : memref<4xf32, #tpu.memory_space<smem>>
    %35 = vector.broadcast %34 : f32 to vector<4x128xf32>
    %36 = arith.addf %33, %35 : vector<4x128xf32>
    %cst_6 = arith.constant 0.000000e+00 : f32
    %37 = vector.broadcast %cst_6 : f32 to vector<4x128xf32>
    %38 = arith.maximumf %36, %37 : vector<4x128xf32>
    %c6 = arith.constant 6 : index
    %39 = memref.load %arg2[%c6] : memref<12xf32, #tpu.memory_space<smem>>
    %40 = vector.broadcast %39 : f32 to vector<4x128xf32>
    %41 = arith.mulf %40, %0 : vector<4x128xf32>
    %c7 = arith.constant 7 : index
    %42 = memref.load %arg2[%c7] : memref<12xf32, #tpu.memory_space<smem>>
    %43 = vector.broadcast %42 : f32 to vector<4x128xf32>
    %44 = arith.mulf %43, %3 : vector<4x128xf32>
    %45 = arith.addf %41, %44 : vector<4x128xf32>
    %c8 = arith.constant 8 : index
    %46 = memref.load %arg2[%c8] : memref<12xf32, #tpu.memory_space<smem>>
    %47 = vector.broadcast %46 : f32 to vector<4x128xf32>
    %48 = arith.mulf %47, %6 : vector<4x128xf32>
    %49 = arith.addf %45, %48 : vector<4x128xf32>
    %c2_7 = arith.constant 2 : index
    %50 = memref.load %arg3[%c2_7] : memref<4xf32, #tpu.memory_space<smem>>
    %51 = vector.broadcast %50 : f32 to vector<4x128xf32>
    %52 = arith.addf %49, %51 : vector<4x128xf32>
    %cst_8 = arith.constant 0.000000e+00 : f32
    %53 = vector.broadcast %cst_8 : f32 to vector<4x128xf32>
    %54 = arith.maximumf %52, %53 : vector<4x128xf32>
    %c9 = arith.constant 9 : index
    %55 = memref.load %arg2[%c9] : memref<12xf32, #tpu.memory_space<smem>>
    %56 = vector.broadcast %55 : f32 to vector<4x128xf32>
    %57 = arith.mulf %56, %0 : vector<4x128xf32>
    %c10 = arith.constant 10 : index
    %58 = memref.load %arg2[%c10] : memref<12xf32, #tpu.memory_space<smem>>
    %59 = vector.broadcast %58 : f32 to vector<4x128xf32>
    %60 = arith.mulf %59, %3 : vector<4x128xf32>
    %61 = arith.addf %57, %60 : vector<4x128xf32>
    %c11 = arith.constant 11 : index
    %62 = memref.load %arg2[%c11] : memref<12xf32, #tpu.memory_space<smem>>
    %63 = vector.broadcast %62 : f32 to vector<4x128xf32>
    %64 = arith.mulf %63, %6 : vector<4x128xf32>
    %65 = arith.addf %61, %64 : vector<4x128xf32>
    %c3_9 = arith.constant 3 : index
    %66 = memref.load %arg3[%c3_9] : memref<4xf32, #tpu.memory_space<smem>>
    %67 = vector.broadcast %66 : f32 to vector<4x128xf32>
    %68 = arith.addf %65, %67 : vector<4x128xf32>
    %cst_10 = arith.constant 0.000000e+00 : f32
    %69 = vector.broadcast %cst_10 : f32 to vector<4x128xf32>
    %70 = arith.maximumf %68, %69 : vector<4x128xf32>
    %71 = tpu.iota {dimensions = array<i32: 1>} : vector<4x128xi32>
    %72 = tpu.iota {dimensions = array<i32: 0>} : vector<4x128xi32>
    %c2_i32 = arith.constant 2 : i32
    %73 = vector.broadcast %c2_i32 : i32 to vector<4x128xi32>
    %74 = arith.cmpi slt, %72, %73 : vector<4x128xi32>
    %c48_i32 = arith.constant 48 : i32
    %c32_i32 = arith.constant 32 : i32
    %75 = vector.broadcast %c48_i32 : i32 to vector<4x128xi32>
    %76 = vector.broadcast %c32_i32 : i32 to vector<4x128xi32>
    %77 = arith.select %74, %75, %76 : vector<4x128xi1>, vector<4x128xi32>
    %78 = arith.cmpi slt, %71, %77 : vector<4x128xi32>
    %79 = vector.extract_strided_slice %22 {offsets = [0, 1], sizes = [4, 127], strides = [1, 1]} : vector<4x128xf32> to vector<4x127xf32>
    %cst_11 = arith.constant 0.000000e+00 : f32
    %80 = vector.broadcast %cst_11 : f32 to vector<4x1xf32>
    %81 = tpu.concatenate %79, %80 in 1 : vector<4x127xf32>, vector<4x1xf32> -> vector<4x128xf32>
    %82 = arith.maximumf %22, %81 : vector<4x128xf32>
    %83 = vector.extract_strided_slice %22 {offsets = [0, 2], sizes = [4, 126], strides = [1, 1]} : vector<4x128xf32> to vector<4x126xf32>
    %cst_12 = arith.constant 0.000000e+00 : f32
    %84 = vector.broadcast %cst_12 : f32 to vector<4x2xf32>
    %85 = tpu.concatenate %83, %84 in 1 : vector<4x126xf32>, vector<4x2xf32> -> vector<4x128xf32>
    %86 = arith.maximumf %82, %85 : vector<4x128xf32>
    %cst_13 = arith.constant 0.000000e+00 : f32
    %87 = vector.broadcast %cst_13 : f32 to vector<4x128xf32>
    %88 = arith.select %78, %86, %87 : vector<4x128xi1>, vector<4x128xf32>
    %89 = vector.extract_strided_slice %38 {offsets = [0, 1], sizes = [4, 127], strides = [1, 1]} : vector<4x128xf32> to vector<4x127xf32>
    %cst_14 = arith.constant 0.000000e+00 : f32
    %90 = vector.broadcast %cst_14 : f32 to vector<4x1xf32>
    %91 = tpu.concatenate %89, %90 in 1 : vector<4x127xf32>, vector<4x1xf32> -> vector<4x128xf32>
    %92 = arith.maximumf %38, %91 : vector<4x128xf32>
    %93 = vector.extract_strided_slice %38 {offsets = [0, 2], sizes = [4, 126], strides = [1, 1]} : vector<4x128xf32> to vector<4x126xf32>
    %cst_15 = arith.constant 0.000000e+00 : f32
    %94 = vector.broadcast %cst_15 : f32 to vector<4x2xf32>
    %95 = tpu.concatenate %93, %94 in 1 : vector<4x126xf32>, vector<4x2xf32> -> vector<4x128xf32>
    %96 = arith.maximumf %92, %95 : vector<4x128xf32>
    %cst_16 = arith.constant 0.000000e+00 : f32
    %97 = vector.broadcast %cst_16 : f32 to vector<4x128xf32>
    %98 = arith.select %78, %96, %97 : vector<4x128xi1>, vector<4x128xf32>
    %99 = vector.extract_strided_slice %54 {offsets = [0, 1], sizes = [4, 127], strides = [1, 1]} : vector<4x128xf32> to vector<4x127xf32>
    %cst_17 = arith.constant 0.000000e+00 : f32
    %100 = vector.broadcast %cst_17 : f32 to vector<4x1xf32>
    %101 = tpu.concatenate %99, %100 in 1 : vector<4x127xf32>, vector<4x1xf32> -> vector<4x128xf32>
    %102 = arith.maximumf %54, %101 : vector<4x128xf32>
    %103 = vector.extract_strided_slice %54 {offsets = [0, 2], sizes = [4, 126], strides = [1, 1]} : vector<4x128xf32> to vector<4x126xf32>
    %cst_18 = arith.constant 0.000000e+00 : f32
    %104 = vector.broadcast %cst_18 : f32 to vector<4x2xf32>
    %105 = tpu.concatenate %103, %104 in 1 : vector<4x126xf32>, vector<4x2xf32> -> vector<4x128xf32>
    %106 = arith.maximumf %102, %105 : vector<4x128xf32>
    %cst_19 = arith.constant 0.000000e+00 : f32
    %107 = vector.broadcast %cst_19 : f32 to vector<4x128xf32>
    %108 = arith.select %78, %106, %107 : vector<4x128xi1>, vector<4x128xf32>
    %109 = vector.extract_strided_slice %70 {offsets = [0, 1], sizes = [4, 127], strides = [1, 1]} : vector<4x128xf32> to vector<4x127xf32>
    %cst_20 = arith.constant 0.000000e+00 : f32
    %110 = vector.broadcast %cst_20 : f32 to vector<4x1xf32>
    %111 = tpu.concatenate %109, %110 in 1 : vector<4x127xf32>, vector<4x1xf32> -> vector<4x128xf32>
    %112 = arith.maximumf %70, %111 : vector<4x128xf32>
    %113 = vector.extract_strided_slice %70 {offsets = [0, 2], sizes = [4, 126], strides = [1, 1]} : vector<4x128xf32> to vector<4x126xf32>
    %cst_21 = arith.constant 0.000000e+00 : f32
    %114 = vector.broadcast %cst_21 : f32 to vector<4x2xf32>
    %115 = tpu.concatenate %113, %114 in 1 : vector<4x126xf32>, vector<4x2xf32> -> vector<4x128xf32>
    %116 = arith.maximumf %112, %115 : vector<4x128xf32>
    %cst_22 = arith.constant 0.000000e+00 : f32
    %117 = vector.broadcast %cst_22 : f32 to vector<4x128xf32>
    %118 = arith.select %78, %116, %117 : vector<4x128xi1>, vector<4x128xf32>
    %cst_23 = arith.constant 0.000000e+00 : f32
    %119 = vector.broadcast %cst_23 : f32 to vector<4x2xf32>
    %120 = vector.extract_strided_slice %88 {offsets = [0, 0], sizes = [4, 126], strides = [1, 1]} : vector<4x128xf32> to vector<4x126xf32>
    %121 = tpu.concatenate %119, %120 in 1 : vector<4x2xf32>, vector<4x126xf32> -> vector<4x128xf32>
    %cst_24 = arith.constant 0.000000e+00 : f32
    %122 = vector.broadcast %cst_24 : f32 to vector<4x2xf32>
    %123 = vector.extract_strided_slice %98 {offsets = [0, 0], sizes = [4, 126], strides = [1, 1]} : vector<4x128xf32> to vector<4x126xf32>
    %124 = tpu.concatenate %122, %123 in 1 : vector<4x2xf32>, vector<4x126xf32> -> vector<4x128xf32>
    %cst_25 = arith.constant 0.000000e+00 : f32
    %125 = vector.broadcast %cst_25 : f32 to vector<4x2xf32>
    %126 = vector.extract_strided_slice %108 {offsets = [0, 0], sizes = [4, 126], strides = [1, 1]} : vector<4x128xf32> to vector<4x126xf32>
    %127 = tpu.concatenate %125, %126 in 1 : vector<4x2xf32>, vector<4x126xf32> -> vector<4x128xf32>
    %cst_26 = arith.constant 0.000000e+00 : f32
    %128 = vector.broadcast %cst_26 : f32 to vector<4x2xf32>
    %129 = vector.extract_strided_slice %118 {offsets = [0, 0], sizes = [4, 126], strides = [1, 1]} : vector<4x128xf32> to vector<4x126xf32>
    %130 = tpu.concatenate %128, %129 in 1 : vector<4x2xf32>, vector<4x126xf32> -> vector<4x128xf32>
    %131 = vector.extract_strided_slice %88 {offsets = [0, 2], sizes = [4, 126], strides = [1, 1]} : vector<4x128xf32> to vector<4x126xf32>
    %cst_27 = arith.constant 0.000000e+00 : f32
    %132 = vector.broadcast %cst_27 : f32 to vector<4x2xf32>
    %133 = tpu.concatenate %131, %132 in 1 : vector<4x126xf32>, vector<4x2xf32> -> vector<4x128xf32>
    %134 = vector.extract_strided_slice %98 {offsets = [0, 2], sizes = [4, 126], strides = [1, 1]} : vector<4x128xf32> to vector<4x126xf32>
    %cst_28 = arith.constant 0.000000e+00 : f32
    %135 = vector.broadcast %cst_28 : f32 to vector<4x2xf32>
    %136 = tpu.concatenate %134, %135 in 1 : vector<4x126xf32>, vector<4x2xf32> -> vector<4x128xf32>
    %137 = vector.extract_strided_slice %108 {offsets = [0, 2], sizes = [4, 126], strides = [1, 1]} : vector<4x128xf32> to vector<4x126xf32>
    %cst_29 = arith.constant 0.000000e+00 : f32
    %138 = vector.broadcast %cst_29 : f32 to vector<4x2xf32>
    %139 = tpu.concatenate %137, %138 in 1 : vector<4x126xf32>, vector<4x2xf32> -> vector<4x128xf32>
    %140 = vector.extract_strided_slice %118 {offsets = [0, 2], sizes = [4, 126], strides = [1, 1]} : vector<4x128xf32> to vector<4x126xf32>
    %cst_30 = arith.constant 0.000000e+00 : f32
    %141 = vector.broadcast %cst_30 : f32 to vector<4x2xf32>
    %142 = tpu.concatenate %140, %141 in 1 : vector<4x126xf32>, vector<4x2xf32> -> vector<4x128xf32>
    %c0_31 = arith.constant 0 : index
    %143 = memref.load %arg4[%c0_31] : memref<24xf32, #tpu.memory_space<smem>>
    %144 = vector.broadcast %143 : f32 to vector<4x128xf32>
    %145 = arith.mulf %144, %121 : vector<4x128xf32>
    %c1_32 = arith.constant 1 : index
    %146 = memref.load %arg4[%c1_32] : memref<24xf32, #tpu.memory_space<smem>>
    %147 = vector.broadcast %146 : f32 to vector<4x128xf32>
    %148 = arith.mulf %147, %88 : vector<4x128xf32>
    %149 = arith.addf %145, %148 : vector<4x128xf32>
    %c2_33 = arith.constant 2 : index
    %150 = memref.load %arg4[%c2_33] : memref<24xf32, #tpu.memory_space<smem>>
    %151 = vector.broadcast %150 : f32 to vector<4x128xf32>
    %152 = arith.mulf %151, %133 : vector<4x128xf32>
    %153 = arith.addf %149, %152 : vector<4x128xf32>
    %c3_34 = arith.constant 3 : index
    %154 = memref.load %arg4[%c3_34] : memref<24xf32, #tpu.memory_space<smem>>
    %155 = vector.broadcast %154 : f32 to vector<4x128xf32>
    %156 = arith.mulf %155, %124 : vector<4x128xf32>
    %c4_35 = arith.constant 4 : index
    %157 = memref.load %arg4[%c4_35] : memref<24xf32, #tpu.memory_space<smem>>
    %158 = vector.broadcast %157 : f32 to vector<4x128xf32>
    %159 = arith.mulf %158, %98 : vector<4x128xf32>
    %160 = arith.addf %156, %159 : vector<4x128xf32>
    %c5_36 = arith.constant 5 : index
    %161 = memref.load %arg4[%c5_36] : memref<24xf32, #tpu.memory_space<smem>>
    %162 = vector.broadcast %161 : f32 to vector<4x128xf32>
    %163 = arith.mulf %162, %136 : vector<4x128xf32>
    %164 = arith.addf %160, %163 : vector<4x128xf32>
    %165 = arith.addf %153, %164 : vector<4x128xf32>
    %c6_37 = arith.constant 6 : index
    %166 = memref.load %arg4[%c6_37] : memref<24xf32, #tpu.memory_space<smem>>
    %167 = vector.broadcast %166 : f32 to vector<4x128xf32>
    %168 = arith.mulf %167, %127 : vector<4x128xf32>
    %c7_38 = arith.constant 7 : index
    %169 = memref.load %arg4[%c7_38] : memref<24xf32, #tpu.memory_space<smem>>
    %170 = vector.broadcast %169 : f32 to vector<4x128xf32>
    %171 = arith.mulf %170, %108 : vector<4x128xf32>
    %172 = arith.addf %168, %171 : vector<4x128xf32>
    %c8_39 = arith.constant 8 : index
    %173 = memref.load %arg4[%c8_39] : memref<24xf32, #tpu.memory_space<smem>>
    %174 = vector.broadcast %173 : f32 to vector<4x128xf32>
    %175 = arith.mulf %174, %139 : vector<4x128xf32>
    %176 = arith.addf %172, %175 : vector<4x128xf32>
    %177 = arith.addf %165, %176 : vector<4x128xf32>
    %c9_40 = arith.constant 9 : index
    %178 = memref.load %arg4[%c9_40] : memref<24xf32, #tpu.memory_space<smem>>
    %179 = vector.broadcast %178 : f32 to vector<4x128xf32>
    %180 = arith.mulf %179, %130 : vector<4x128xf32>
    %c10_41 = arith.constant 10 : index
    %181 = memref.load %arg4[%c10_41] : memref<24xf32, #tpu.memory_space<smem>>
    %182 = vector.broadcast %181 : f32 to vector<4x128xf32>
    %183 = arith.mulf %182, %118 : vector<4x128xf32>
    %184 = arith.addf %180, %183 : vector<4x128xf32>
    %c11_42 = arith.constant 11 : index
    %185 = memref.load %arg4[%c11_42] : memref<24xf32, #tpu.memory_space<smem>>
    %186 = vector.broadcast %185 : f32 to vector<4x128xf32>
    %187 = arith.mulf %186, %142 : vector<4x128xf32>
    %188 = arith.addf %184, %187 : vector<4x128xf32>
    %189 = arith.addf %177, %188 : vector<4x128xf32>
    %c0_43 = arith.constant 0 : index
    %190 = memref.load %arg5[%c0_43] : memref<2xf32, #tpu.memory_space<smem>>
    %191 = vector.broadcast %190 : f32 to vector<4x128xf32>
    %192 = arith.addf %189, %191 : vector<4x128xf32>
    %c12 = arith.constant 12 : index
    %193 = memref.load %arg4[%c12] : memref<24xf32, #tpu.memory_space<smem>>
    %194 = vector.broadcast %193 : f32 to vector<4x128xf32>
    %195 = arith.mulf %194, %121 : vector<4x128xf32>
    %c13 = arith.constant 13 : index
    %196 = memref.load %arg4[%c13] : memref<24xf32, #tpu.memory_space<smem>>
    %197 = vector.broadcast %196 : f32 to vector<4x128xf32>
    %198 = arith.mulf %197, %88 : vector<4x128xf32>
    %199 = arith.addf %195, %198 : vector<4x128xf32>
    %c14 = arith.constant 14 : index
    %200 = memref.load %arg4[%c14] : memref<24xf32, #tpu.memory_space<smem>>
    %201 = vector.broadcast %200 : f32 to vector<4x128xf32>
    %202 = arith.mulf %201, %133 : vector<4x128xf32>
    %203 = arith.addf %199, %202 : vector<4x128xf32>
    %c15 = arith.constant 15 : index
    %204 = memref.load %arg4[%c15] : memref<24xf32, #tpu.memory_space<smem>>
    %205 = vector.broadcast %204 : f32 to vector<4x128xf32>
    %206 = arith.mulf %205, %124 : vector<4x128xf32>
    %c16 = arith.constant 16 : index
    %207 = memref.load %arg4[%c16] : memref<24xf32, #tpu.memory_space<smem>>
    %208 = vector.broadcast %207 : f32 to vector<4x128xf32>
    %209 = arith.mulf %208, %98 : vector<4x128xf32>
    %210 = arith.addf %206, %209 : vector<4x128xf32>
    %c17 = arith.constant 17 : index
    %211 = memref.load %arg4[%c17] : memref<24xf32, #tpu.memory_space<smem>>
    %212 = vector.broadcast %211 : f32 to vector<4x128xf32>
    %213 = arith.mulf %212, %136 : vector<4x128xf32>
    %214 = arith.addf %210, %213 : vector<4x128xf32>
    %215 = arith.addf %203, %214 : vector<4x128xf32>
    %c18 = arith.constant 18 : index
    %216 = memref.load %arg4[%c18] : memref<24xf32, #tpu.memory_space<smem>>
    %217 = vector.broadcast %216 : f32 to vector<4x128xf32>
    %218 = arith.mulf %217, %127 : vector<4x128xf32>
    %c19 = arith.constant 19 : index
    %219 = memref.load %arg4[%c19] : memref<24xf32, #tpu.memory_space<smem>>
    %220 = vector.broadcast %219 : f32 to vector<4x128xf32>
    %221 = arith.mulf %220, %108 : vector<4x128xf32>
    %222 = arith.addf %218, %221 : vector<4x128xf32>
    %c20 = arith.constant 20 : index
    %223 = memref.load %arg4[%c20] : memref<24xf32, #tpu.memory_space<smem>>
    %224 = vector.broadcast %223 : f32 to vector<4x128xf32>
    %225 = arith.mulf %224, %139 : vector<4x128xf32>
    %226 = arith.addf %222, %225 : vector<4x128xf32>
    %227 = arith.addf %215, %226 : vector<4x128xf32>
    %c21 = arith.constant 21 : index
    %228 = memref.load %arg4[%c21] : memref<24xf32, #tpu.memory_space<smem>>
    %229 = vector.broadcast %228 : f32 to vector<4x128xf32>
    %230 = arith.mulf %229, %130 : vector<4x128xf32>
    %c22 = arith.constant 22 : index
    %231 = memref.load %arg4[%c22] : memref<24xf32, #tpu.memory_space<smem>>
    %232 = vector.broadcast %231 : f32 to vector<4x128xf32>
    %233 = arith.mulf %232, %118 : vector<4x128xf32>
    %234 = arith.addf %230, %233 : vector<4x128xf32>
    %c23 = arith.constant 23 : index
    %235 = memref.load %arg4[%c23] : memref<24xf32, #tpu.memory_space<smem>>
    %236 = vector.broadcast %235 : f32 to vector<4x128xf32>
    %237 = arith.mulf %236, %142 : vector<4x128xf32>
    %238 = arith.addf %234, %237 : vector<4x128xf32>
    %239 = arith.addf %227, %238 : vector<4x128xf32>
    %c1_44 = arith.constant 1 : index
    %240 = memref.load %arg5[%c1_44] : memref<2xf32, #tpu.memory_space<smem>>
    %241 = vector.broadcast %240 : f32 to vector<4x128xf32>
    %242 = arith.addf %239, %241 : vector<4x128xf32>
    %243 = vector.extract_strided_slice %192 {offsets = [0, 2], sizes = [4, 126], strides = [1, 1]} : vector<4x128xf32> to vector<4x126xf32>
    %cst_45 = arith.constant 0.000000e+00 : f32
    %244 = vector.broadcast %cst_45 : f32 to vector<4x2xf32>
    %245 = tpu.concatenate %243, %244 in 1 : vector<4x126xf32>, vector<4x2xf32> -> vector<4x128xf32>
    %246 = arith.maximumf %192, %245 : vector<4x128xf32>
    %c0_46 = arith.constant 0 : index
    %c0_47 = arith.constant 0 : index
    %c0_48 = arith.constant 0 : index
    %247 = vector.load %arg1[%c0_46, %c0_47, %c0_48] : memref<2x4x128xf32, #tpu.memory_space<vmem>>, vector<1x4x128xf32>
    %248 = vector.shape_cast %247 : vector<1x4x128xf32> to vector<4x128xf32>
    %249 = arith.mulf %246, %248 : vector<4x128xf32>
    %250 = vector.extract_strided_slice %242 {offsets = [0, 2], sizes = [4, 126], strides = [1, 1]} : vector<4x128xf32> to vector<4x126xf32>
    %cst_49 = arith.constant 0.000000e+00 : f32
    %251 = vector.broadcast %cst_49 : f32 to vector<4x2xf32>
    %252 = tpu.concatenate %250, %251 in 1 : vector<4x126xf32>, vector<4x2xf32> -> vector<4x128xf32>
    %253 = arith.maximumf %242, %252 : vector<4x128xf32>
    %c1_50 = arith.constant 1 : index
    %c0_51 = arith.constant 0 : index
    %c0_52 = arith.constant 0 : index
    %254 = vector.load %arg1[%c1_50, %c0_51, %c0_52] : memref<2x4x128xf32, #tpu.memory_space<vmem>>, vector<1x4x128xf32>
    %255 = vector.shape_cast %254 : vector<1x4x128xf32> to vector<4x128xf32>
    %256 = arith.mulf %253, %255 : vector<4x128xf32>
    %257 = arith.addf %249, %256 : vector<4x128xf32>
    %cst_53 = arith.constant dense<0.000000e+00> : vector<4xf32>
    %258 = vector.multi_reduction <add>, %257, %cst_53 [1] : vector<4x128xf32> to vector<4xf32>
    %259 = vector.shape_cast %258 : vector<4xf32> to vector<4x1xf32>
    %260 = vector.extract_strided_slice %259 {offsets = [0, 0], sizes = [2, 1], strides = [1, 1]} : vector<4x1xf32> to vector<2x1xf32>
    %c0_54 = arith.constant 0 : index
    %261 = memref.load %arg6[%c0_54] : memref<2xf32, #tpu.memory_space<smem>>
    %262 = vector.broadcast %261 : f32 to vector<2x1xf32>
    %263 = arith.addf %260, %262 : vector<2x1xf32>
    %264 = vector.extract_strided_slice %259 {offsets = [2, 0], sizes = [2, 1], strides = [1, 1]} : vector<4x1xf32> to vector<2x1xf32>
    %c1_55 = arith.constant 1 : index
    %265 = memref.load %arg6[%c1_55] : memref<2xf32, #tpu.memory_space<smem>>
    %266 = vector.broadcast %265 : f32 to vector<2x1xf32>
    %267 = arith.addf %264, %266 : vector<2x1xf32>
    %268 = arith.mulf %263, %267 : vector<2x1xf32>
    %269 = arith.negf %268 : vector<2x1xf32>
    %270 = math.exp %269 : vector<2x1xf32>
    %cst_56 = arith.constant 1.000000e+00 : f32
    %271 = vector.broadcast %cst_56 : f32 to vector<2x1xf32>
    %272 = arith.addf %271, %270 : vector<2x1xf32>
    %273 = arith.divf %271, %272 : vector<2x1xf32>
    %c0_57 = arith.constant 0 : index
    %c0_58 = arith.constant 0 : index
    %274 = vector.load %arg7[%c0_57, %c0_58] : memref<2x1xf32, #tpu.memory_space<vmem>>, vector<2x1xf32>
    tpu.vector_store %arg7[%c0_57, %c0_58], %273 {strides = array<i32>} : memref<2x1xf32, #tpu.memory_space<vmem>>, vector<2x1xf32>,
    return
  }
}

</mosaic_0001>

<bundles_post_ra>
// kernel: tpu_custom_call.1
= control target key start
LH: loop header
LB: loop body
LE: loop exit
PB: predicated region body
PF: predicated region fallthrough
CT: control target
= control target key end

     0   :  { %12 = vsyncpa [#allocation3], 0  ;;  %s834_s0 = inlined_call_operand.hbm [shape: f32[4,128], index: 0, kind: input, shape index: {}]   ;;  %s835_s1 = inlined_call_operand.hbm [shape: f32[2,4,128], index: 1, kind: input, shape index: {}]   ;;  %s836_s2 = inlined_call_operand.vmem [shape: f32[12], index: 2, kind: input, shape index: {}]   ;;  %s837_s3 = inlined_call_operand.vmem [shape: f32[4], index: 3, kind: input, shape index: {}]   ;;  %s838_s4 = inlined_call_operand.vmem [shape: f32[24], index: 4, kind: input, shape index: {}]   ;;  %s839_s5 = inlined_call_operand.vmem [shape: f32[2], index: 5, kind: input, shape index: {}]   ;;  %s840_s6 = inlined_call_operand.vmem [shape: f32[2], index: 6, kind: input, shape index: {}]   ;;  %s841_s7 = inlined_call_operand.vmem [shape: f32[2,1], index: 7, kind: output, shape index: {}]  }
   0x1   :  { %13 = vsyncpa [#allocation6], 0 }
   0x2   :  { %14 = vsyncpa [#allocation4], 0 }
   0x3   :  { %15 = vsyncpa [#allocation9], 0  ;;  %s55_s26 = sshll.u32 %s837_s3, 4  ;;  %s56_s26 = int_to_ptr.vmem [resolvable:$true] %s55_s26 }
   0x4   :  { %16 = vsyncpa [#allocation12], 0  ;;  %s75_s29 = sshll.u32 %s839_s5, 4  ;;  %s481_s30 = scalar_lea.vmem %s56_s26, 16  ;;  %s76_s29 = int_to_ptr.vmem [resolvable:$true] %s75_s29 }
   0x5   :  { %p482_p0 = scmp.ne.s32.totalorder %s56_s26, %s481_s30  ;;  %p486_p1 = scmp.lt.s32.totalorder %s56_s26, %s56_s26 }
   0x6   :  { %p487_p2 = scmp.lt.s32.totalorder %s481_s30, %s481_s30 }
   0x8   :  { %p488_p3 = por %p487_p2, %p486_p1 }
   0xa   :  { %p489_p4 = pnand %p488_p3, %p482_p0 }
   0xc   :  { %492 = shalt.err (!%p489_p4)
}
   0xd   :  { %s591_s8 = smov [#allocation8]   ;;  %s493_s9 = scalar_lea.vmem %s76_s29, 16 }
   0xe   :  { %58 = dma.vmem_to_smem %s56_s26, 16, %s591_s8, [#allocation9]  }
   0xf   :  { %p494_p5 = scmp.ne.s32.totalorder %s76_s29, %s493_s9  ;;  %p498_p6 = scmp.lt.s32.totalorder %s76_s29, %s76_s29 }
  0x10   :  { %p499_p7 = scmp.lt.s32.totalorder %s493_s9, %s493_s9 }
  0x12   :  { %p500_p8 = por %p499_p7, %p498_p6 }
  0x14   :  { %p501_p9 = pnand %p500_p8, %p494_p5 }
  0x16   :  { %504 = shalt.err (!%p501_p9)
}
  0x17   :  { %s592_s3 = smov [#allocation11]   ;;  %s593_s5 = smov [#allocation2]  }
  0x18   :  { %78 = dma.vmem_to_smem %s76_s29, 16, %s592_s3, [#allocation12]  }
  0x19   :  { %s23_s10 = sshll.u32 %s593_s5, 4  ;;  %s594_s11 = smov [#allocation5]   ;;  %s24_s10 = int_to_ptr.vmem [resolvable:$true] %s23_s10 }
  0x1a   :  { %s32_s12 = sshll.u32 %s594_s11, 4  ;;  %s513_s13 = scalar_lea.vmem %s24_s10, 64  ;;  %s33_s12 = int_to_ptr.vmem [resolvable:$true] %s32_s12 }
  0x1b   :  { %p514_p10 = scmp.ne.s32.totalorder %s24_s10, %s513_s13  ;;  %p518_p11 = scmp.lt.s32.totalorder %s24_s10, %s24_s10 }
  0x1c   :  { %p519_p12 = scmp.lt.s32.totalorder %s513_s13, %s513_s13 }
  0x1e   :  { %p520_p13 = por %p519_p12, %p518_p11 }
  0x20   :  { %p521_p0 = pnand %p520_p13, %p514_p10 }
  0x22   :  { %524 = shalt.err (!%p521_p0)
}
  0x23   :  { %26 = dma.hbm_to_vmem [thread:$0]  %s834_s0, 64, %s24_s10, [#allocation3]  }
  0x24   :  { %s533_s16 = scalar_lea.vmem %s33_s12, 128  ;;  %p538_p2 = scmp.lt.s32.totalorder %s33_s12, %s33_s12 }
  0x25   :  { %p534_p1 = scmp.ne.s32.totalorder %s33_s12, %s533_s16  ;;  %p539_p3 = scmp.lt.s32.totalorder %s533_s16, %s533_s16 }
  0x27   :  { %p540_p4 = por %p539_p3, %p538_p2 }
  0x29   :  { %p541_p5 = pnand %p540_p4, %p534_p1 }
  0x2b   :  { %544 = shalt.err (!%p541_p5)
}
  0x2c   :  { %s595_s17 = smov 64   ;;  %s596_s18 = smov 4  }
  0x2d   :  { %38 = dma.hbm_to_vmem [thread:$0]  %s835_s1, 128, %s33_s12, [#allocation6], %s595_s17, %s595_s17, %s596_s18  }
  0x2e   :  { %s45_s23 = sshll.u32 %s836_s2, 4  ;;  %s65_s25 = sshll.u32 %s838_s4, 4  ;;  %s46_s23 = int_to_ptr.vmem [resolvable:$true] %s45_s23  ;;  %s66_s25 = int_to_ptr.vmem [resolvable:$true] %s65_s25 }
  0x2f   :  { %s545_s26 = scalar_lea.vmem %s46_s23, 16  ;;  %p550_p7 = scmp.lt.s32.totalorder %s46_s23, %s46_s23 }
  0x30   :  { %p546_p6 = scmp.ne.s32.totalorder %s46_s23, %s545_s26  ;;  %p551_p8 = scmp.lt.s32.totalorder %s545_s26, %s545_s26 }
  0x32   :  { %p552_p9 = por %p551_p8, %p550_p7 }
  0x34   :  { %p553_p10 = pnand %p552_p9, %p546_p6 }
  0x36   :  { %556 = shalt.err (!%p553_p10)
}
  0x37   :  { %s597_s27 = smov [#allocation7]   ;;  %s557_s1 = scalar_lea.vmem %s66_s25, 16 }
  0x38   :  { %48 = dma.vmem_to_smem %s46_s23, 16, %s597_s27, [#allocation4]  }
  0x39   :  { %p558_p11 = scmp.ne.s32.totalorder %s66_s25, %s557_s1  ;;  %p562_p12 = scmp.lt.s32.totalorder %s66_s25, %s66_s25 }
  0x3a   :  { %p563_p13 = scmp.lt.s32.totalorder %s557_s1, %s557_s1 }
  0x3c   :  { %p564_p0 = por %p563_p13, %p562_p12 }
  0x3e   :  { %p565_p1 = pnand %p564_p0, %p558_p11 }
  0x40   :  { %568 = shalt.err (!%p565_p1)
}
  0x41   :  { %s598_s2 = smov [#allocation10]   ;;  %s85_s29 = sshll.u32 %s840_s6, 4  ;;  %s86_s29 = int_to_ptr.vmem [resolvable:$true] %s85_s29 }
  0x42   :  { %68 = dma.vmem_to_smem %s66_s25, 16, %s598_s2, [#allocation9]  }
  0x43   :  { %s569_s30 = scalar_lea.vmem %s86_s29, 16  ;;  %p574_p3 = scmp.lt.s32.totalorder %s86_s29, %s86_s29 }
  0x44   :  { %p570_p2 = scmp.ne.s32.totalorder %s86_s29, %s569_s30  ;;  %p575_p4 = scmp.lt.s32.totalorder %s569_s30, %s569_s30 }
  0x46   :  { %p576_p5 = por %p575_p4, %p574_p3 }
  0x48   :  { %p577_p6 = pnand %p576_p5, %p570_p2 }
  0x4a   :  { %580 = shalt.err (!%p577_p6)
}
  0x4b   :  { %s599_s8 = smov [#allocation13]  }
  0x4c   :  { %88 = dma.vmem_to_smem %s86_s29, 16, %s599_s8, [#allocation12]  }
  0x4d   :  { %581 = dma.done.wait [#allocation3], 64  }
  0x4e   :  { %582 = vsyncadd [#allocation3], 4294967232 }
  0x4f   :  { %583 = dma.done.wait [#allocation6], 128  }
  0x50   :  { %584 = vsyncadd [#allocation6], 4294967168 }
  0x51   :  { %585 = dma.done.wait [#allocation4], 16  }
  0x52   :  { %586 = vsyncadd [#allocation4], 4294967280 }
  0x53   :  { %587 = dma.done.wait [#allocation9], 32  }
  0x54   :  { %588 = vsyncadd [#allocation9], 4294967264 }
  0x55   :  { %589 = dma.done.wait [#allocation12], 32  }
  0x56   :  { %590 = vsyncadd [#allocation12], 4294967264 }
  0x57   :  { %110 = sfence }
  0x58   :  { %v111_v0 = vld [vmem:[#allocation2] sm:$0xf]  ;;  %s600_s6 = smov 127   ;;  %s601_s9 = smov 126   ;;  %vm116_vm0 = vcmask 1039360   ;;  %vm121_vm1 = vcmask 1031168   ;;  %v183_v49 = vlaneseq }
  0x59   :  { %113 = vrot.lane.b32.xlu0 %v111_v0, %s600_s6  ;;  %s123_s3 = sld [smem:[#allocation7]]  ;;  %v602_v54 = vmov 32   ;;  %s603_s24 = smov 2   ;;  %vm242_vm4 = vcmask 15360   ;;  %vm393_vm5 = vcmask 1043456   ;;  %vm413_vm6 = vcmask 1024  }
  0x5a   :  { %s424_s5 = sld [smem:[#allocation7 + $0x1]]  ;;  %v186_v50 = vshrl.u32 %v183_v49, 7  ;;  %v184_v51 = vand.u32 127, %v183_v49 }
  0x5b   :  { %s426_s10 = sld [smem:[#allocation7 + $0x3]] }
  0x5c   :  { %s427_s11 = sld [smem:[#allocation7 + $0x4]]  ;;  %vm187_vm2 = vcmp.lt.s32.totalorder %v186_v50, 2 }
  0x5d   :  { %118 = vrot.lane.b32.xlu0 %v111_v0, %s601_s9  ;;  %s430_s12 = sld [smem:[#allocation7 + $0x6]]  ;;  %v188_v55 = vsel %vm187_vm2, 48, %v602_v54 }
  0x5e   :  { %s431_s13 = sld [smem:[#allocation7 + $0x7]]  ;;  %vm189_vm3 = vcmp.lt.s32.totalorder %v184_v51, %v188_v55 }
  0x5f   :  { %s667_s14 = sld [smem:[#allocation7 + $0x9]]  ;;  %v124_v1 = vstv %s123_s3 }
  0x60   :  { %s669_s15 = sld [smem:[#allocation7 + $0xa]]  ;;  %v127_v4 = vstv %s424_s5  ;;  %v125_v8 = vmul.f32 %v124_v1, %v111_v0 }
  0x61   :  { %s671_s16 = sld [smem:[#allocation7 + $0x2]]  ;;  %v139_v2 = vstv %s426_s10 }
  0x62   :  { %s673_s17 = sld [smem:[#allocation7 + $0x5]]  ;;  %v142_v5 = vstv %s427_s11  ;;  %v140_v11 = vmul.f32 %v139_v2, %v111_v0 }
  0x63   :  { %s675_s18 = sld [smem:[#allocation7 + $0x8]]  ;;  %v154_v3 = vstv %s430_s12 }
  0x64   :  { %s677_s19 = sld [smem:[#allocation7 + $0xb]]  ;;  %v157_v6 = vstv %s431_s13  ;;  %v155_v12 = vmul.f32 %v154_v3, %v111_v0 }
  0x65   :  { %s679_s20 = sld [smem:[#allocation8]]  ;;  %v169_v9 = vstv %s667_s14 }
  0x66   :  { %s681_s21 = sld [smem:[#allocation8 + $0x2]]  ;;  %v172_v13 = vstv %s669_s15  ;;  %v170_v20 = vmul.f32 %v169_v9, %v111_v0 }
  0x67   :  { %s685_s22 = sld [smem:[#allocation8 + $0x1]]  ;;  %v131_v17 = vstv %s671_s16 }
  0x68   :  { %v146_v18 = vstv %s673_s17  ;;  %s437_s23 = sld [smem:[#allocation8 + $0x3]] }
  0x69   :  { %v161_v19 = vstv %s675_s18  ;;  %s736_s0 = sld [smem:[#allocation10 + $0x1]] }
  0x6a   :  { %v176_v21 = vstv %s677_s19  ;;  %s738_s25 = sld [smem:[#allocation10 + $0xd]] }
  0x6b   :  { %v135_v31 = vstv %s679_s20  ;;  %s740_s26 = sld [smem:[#allocation10 + $0x4]] }
  0x6c   :  { %v165_v36 = vstv %s681_s21  ;;  %s742_s27 = sld [smem:[#allocation10 + $0x10]] }
  0x6d   :  { %v150_v37 = vstv %s685_s22  ;;  %s744_s1 = sld [smem:[#allocation10 + $0x7]] }
  0x6e   :  { %v180_v44 = vstv %s437_s23  ;;  %s746_s2 = sld [smem:[#allocation10 + $0x13]] }
  0x6f   :  { %s748_s4 = sld [smem:[#allocation10 + $0xa]] }
  0x70   :  { %s750_s28 = sld [smem:[#allocation10 + $0x16]] }
  0x71   :  { %s752_s29 = sld [smem:[#allocation10]] }
  0x72   :  { %s754_s30 = sld [smem:[#allocation10 + $0xc]] }
  0x73   :  { %s756_s8 = sld [smem:[#allocation10 + $0x3]] }
  0x74   :  { %s760_s3 = sld [smem:[#allocation10 + $0x6]] }
  0x75   :  { %s762_s5 = sld [smem:[#allocation10 + $0x12]] }
  0x76   :  { %s764_s10 = sld [smem:[#allocation10 + $0x2]] }
  0x77   :  { %s766_s11 = sld [smem:[#allocation10 + $0xe]] }
  0x78   :  { %s768_s12 = sld [smem:[#allocation10 + $0x5]] }
  0x79   :  { %s770_s13 = sld [smem:[#allocation10 + $0x11]] }
  0x7a   :  { %s772_s14 = sld [smem:[#allocation10 + $0x9]] }
  0x7b   :  { %s774_s15 = sld [smem:[#allocation10 + $0x15]] }
  0x7c   :  { %s776_s16 = sld [smem:[#allocation10 + $0x8]] }
  0x7d   :  { %s778_s17 = sld [smem:[#allocation10 + $0x14]] }
  0x7e   :  { %s782_s18 = sld [smem:[#allocation10 + $0xb]] }
  0x7f   :  { %s788_s19 = sld [smem:[#allocation10 + $0x17]] }
  0x80   :  { %s820_s20 = sld [smem:[#allocation11 + $0x1]] }
  0x81   :  { %s322_s21 = sld [smem:[#allocation11]] }
  0x82   :  { %v306_v51 = vstv %s776_s16  ;;  %s462_s22 = sld [smem:[#allocation13 + $0x1]] }
  0x83   :  { %v356_v55 = vstv %s778_s17  ;;  %s397_s23 = sld [smem:[#allocation13]] }
  0xcb   :  { %v114_v7 = vpop.permute.xlu0 %113 }
  0xcc   :  { %v117_v10 = vsel %vm116_vm0, %v114_v7, 0.0 }
  0xcd   :  { %v128_v14 = vmul.f32 %v127_v4, %v117_v10  ;;  %v143_v15 = vmul.f32 %v142_v5, %v117_v10  ;;  %v158_v16 = vmul.f32 %v157_v6, %v117_v10  ;;  %v173_v25 = vmul.f32 %v172_v13, %v117_v10 }
  0xcf   :  { %v119_v22 = vpop.permute.xlu0 %118  ;;  %v129_v23 = vadd.f32 %v128_v14, %v125_v8  ;;  %v144_v24 = vadd.f32 %v143_v15, %v140_v11  ;;  %v159_v27 = vadd.f32 %v158_v16, %v155_v12  ;;  %v174_v38 = vadd.f32 %v173_v25, %v170_v20 }
  0xd0   :  { %v122_v26 = vsel %vm121_vm1, %v119_v22, 0.0  ;;  %v340_v22 = vstv %s742_s27  ;;  %v276_v25 = vstv %s752_s29 }
  0xd1   :  { %v132_v28 = vmul.f32 %v131_v17, %v122_v26  ;;  %v147_v29 = vmul.f32 %v146_v18, %v122_v26  ;;  %v162_v30 = vmul.f32 %v161_v19, %v122_v26  ;;  %v177_v32 = vmul.f32 %v176_v21, %v122_v26 }
  0xd2   :  { %v279_v18 = vstv %s736_s0  ;;  %v329_v19 = vstv %s738_s25  ;;  %v290_v21 = vstv %s740_s26  ;;  %v326_v26 = vstv %s754_s30 }
  0xd3   :  { %v133_v33 = vadd.f32 %v132_v28, %v129_v23  ;;  %v163_v34 = vadd.f32 %v162_v30, %v159_v27  ;;  %v148_v35 = vadd.f32 %v147_v29, %v144_v24  ;;  %v178_v43 = vadd.f32 %v177_v32, %v174_v38 }
  0xd4   :  { %v302_v23 = vstv %s744_s1  ;;  %v352_v24 = vstv %s746_s2  ;;  %v314_v28 = vstv %s748_s4  ;;  %v364_v29 = vstv %s750_s28 }
  0xd5   :  { %v136_v39 = vadd.f32 %v135_v31, %v133_v33  ;;  %v166_v41 = vadd.f32 %v165_v36, %v163_v34  ;;  %v151_v42 = vadd.f32 %v150_v37, %v148_v35  ;;  %v181_v47 = vadd.f32 %v180_v44, %v178_v43 }
  0xd6   :  { %v287_v31 = vstv %s756_s8  ;;  %v299_v33 = vstv %s760_s3  ;;  %v349_v36 = vstv %s762_s5  ;;  %v283_v37 = vstv %s764_s10 }
  0xd7   :  { %v137_v40 = vmax.f32 %v136_v39, 0.0  ;;  %v167_v45 = vmax.f32 %v166_v41, 0.0  ;;  %v152_v46 = vmax.f32 %v151_v42, 0.0  ;;  %v182_v48 = vmax.f32 %v181_v47, 0.0 }
  0xd8   :  { %v333_v39 = vstv %s766_s11  ;;  %v344_v41 = vstv %s770_s13  ;;  %v361_v47 = vstv %s774_s15 }
  0xd9   :  { %196 = vrot.lane.b32.xlu0 %v137_v40, %s601_s9  ;;  %191 = vrot.lane.b32.xlu1 %v137_v40, %s600_s6 }
  0xdd   :  { %215 = vrot.lane.b32.xlu0 %v167_v45, %s600_s6  ;;  %203 = vrot.lane.b32.xlu1 %v152_v46, %s600_s6 }
  0xe1   :  { %227 = vrot.lane.b32.xlu0 %v182_v48, %s600_s6  ;;  %208 = vrot.lane.b32.xlu1 %v152_v46, %s601_s9  ;;  %s758_s6 = sld [smem:[#allocation10 + $0xf]] }
  0xe5   :  { %220 = vrot.lane.b32.xlu1 %v167_v45, %s601_s9 }
  0xe7   :  { %v337_v32 = vstv %s758_s6 }
  0xe9   :  { %232 = vrot.lane.b32.xlu1 %v182_v48, %s601_s9 }
 0x14b   :  { %v197_v52 = vpop.permute.xlu0 %196  ;;  %v192_v53 = vpop.permute.xlu1 %191 }
 0x14c   :  { %v194_v56 = vsel %vm116_vm0, %v192_v53, 0.0  ;;  %v199_v58 = vsel %vm121_vm1, %v197_v52, 0.0 }
 0x14d   :  { %v195_v57 = vmax.f32 %v137_v40, %v194_v56  ;;  %v294_v40 = vstv %s768_s12 }
 0x14f   :  { %v200_v59 = vmax.f32 %v195_v57, %v199_v58  ;;  %v216_v60 = vpop.permute.xlu0 %215  ;;  %v204_v61 = vpop.permute.xlu1 %203  ;;  %v318_v58 = vstv %s782_s18 }
 0x150   :  { %v206_v62 = vsel %vm116_vm0, %v204_v61, 0.0  ;;  %v218_v2 = vsel %vm116_vm0, %v216_v60, 0.0 }
 0x151   :  { %v708_v63 = vsel %vm189_vm3, %v200_v59, 0.0  ;;  %v207_v0 = vmax.f32 %v152_v46, %v206_v62  ;;  %v219_v6 = vmax.f32 %v167_v45, %v218_v2  ;;  %v311_v46 = vstv %s772_s14 }
 0x152   :  { %239 = vrot.lane.b32.xlu0 %v708_v63, %s603_s24  ;;  %v280_v34 = vmul.f32 %v279_v18, %v708_v63  ;;  %v330_v35 = vmul.f32 %v329_v19, %v708_v63  ;;  %v368_v59 = vstv %s788_s19 }
 0x153   :  { %v209_v1 = vpop.permute.xlu1 %208  ;;  %v228_v4 = vpop.permute.xlu0 %227 }
 0x154   :  { %v211_v3 = vsel %vm121_vm1, %v209_v1, 0.0  ;;  %v230_v9 = vsel %vm116_vm0, %v228_v4, 0.0 }
 0x155   :  { %v212_v5 = vmax.f32 %v207_v0, %v211_v3  ;;  %v231_v12 = vmax.f32 %v182_v48, %v230_v9 }
 0x157   :  { %v221_v7 = vpop.permute.xlu1 %220  ;;  %v714_v8 = vsel %vm189_vm3, %v212_v5, 0.0 }
 0x158   :  { %v223_v10 = vsel %vm121_vm1, %v221_v7, 0.0  ;;  %245 = vrot.lane.b32.xlu1 %v714_v8, %s603_s24  ;;  %v291_v48 = vmul.f32 %v290_v21, %v714_v8  ;;  %v341_v49 = vmul.f32 %v340_v22, %v714_v8 }
 0x159   :  { %v224_v11 = vmax.f32 %v219_v6, %v223_v10 }
 0x15b   :  { %v233_v13 = vpop.permute.xlu1 %232  ;;  %v720_v14 = vsel %vm189_vm3, %v224_v11, 0.0 }
 0x15c   :  { %v235_v15 = vsel %vm121_vm1, %v233_v13, 0.0  ;;  %259 = vrot.lane.b32.xlu1 %v708_v63, %s601_s9  ;;  %250 = vrot.lane.b32.xlu0 %v720_v14, %s603_s24  ;;  %v303_v62 = vmul.f32 %v302_v23, %v720_v14  ;;  %v353_v63 = vmul.f32 %v352_v24, %v720_v14 }
 0x15d   :  { %v236_v16 = vmax.f32 %v231_v12, %v235_v15 }
 0x15f   :  { %v727_v17 = vsel %vm189_vm3, %v236_v16, 0.0 }
 0x160   :  { %263 = vrot.lane.b32.xlu0 %v714_v8, %s601_s9  ;;  %255 = vrot.lane.b32.xlu1 %v727_v17, %s603_s24  ;;  %v315_v12 = vmul.f32 %v314_v28, %v727_v17  ;;  %v365_v13 = vmul.f32 %v364_v29, %v727_v17 }
 0x164   :  { %267 = vrot.lane.b32.xlu0 %v720_v14, %s601_s9  ;;  %271 = vrot.lane.b32.xlu1 %v727_v17, %s601_s9 }
 0x1c4   :  { %v240_v20 = vpop.permute.xlu0 %239 }
 0x1c5   :  { %v243_v30 = vsel %vm242_vm4, 0.0, %v240_v20 }
 0x1c6   :  { %v277_v42 = vmul.f32 %v276_v25, %v243_v30  ;;  %v327_v43 = vmul.f32 %v326_v26, %v243_v30 }
 0x1c8   :  { %v281_v60 = vadd.f32 %v280_v34, %v277_v42  ;;  %v331_v61 = vadd.f32 %v330_v35, %v327_v43 }
 0x1ca   :  { %v246_v27 = vpop.permute.xlu1 %245 }
 0x1cb   :  { %v248_v38 = vsel %vm242_vm4, 0.0, %v246_v27 }
 0x1cc   :  { %v288_v52 = vmul.f32 %v287_v31, %v248_v38  ;;  %v338_v53 = vmul.f32 %v337_v32, %v248_v38  ;;  %v373_v38 = vstv %s820_s20 }
 0x1ce   :  { %v251_v44 = vpop.permute.xlu0 %250  ;;  %v260_v45 = vpop.permute.xlu1 %259  ;;  %v292_v6 = vadd.f32 %v291_v48, %v288_v52  ;;  %v342_v7 = vadd.f32 %v341_v49, %v338_v53  ;;  %v381_v48 = vld [vmem:[#allocation5] sm:$0xf] }
 0x1cf   :  { %v262_v50 = vsel %vm121_vm1, %v260_v45, 0.0  ;;  %v253_v54 = vsel %vm242_vm4, 0.0, %v251_v44 }
 0x1d0   :  { %v284_v56 = vmul.f32 %v283_v37, %v262_v50  ;;  %v334_v57 = vmul.f32 %v333_v39, %v262_v50  ;;  %v300_v2 = vmul.f32 %v299_v33, %v253_v54  ;;  %v350_v3 = vmul.f32 %v349_v36, %v253_v54 }
 0x1d1   :  { %v323_v39 = vstv %s322_s21 }
 0x1d2   :  { %v264_v0 = vpop.permute.xlu0 %263  ;;  %v256_v1 = vpop.permute.xlu1 %255  ;;  %v285_v10 = vadd.f32 %v284_v56, %v281_v60  ;;  %v335_v11 = vadd.f32 %v334_v57, %v331_v61  ;;  %v304_v21 = vadd.f32 %v303_v62, %v300_v2  ;;  %v354_v22 = vadd.f32 %v353_v63, %v350_v3 }
 0x1d3   :  { %v266_v4 = vsel %vm121_vm1, %v264_v0, 0.0  ;;  %v258_v5 = vsel %vm242_vm4, 0.0, %v256_v1  ;;  %v401_v56 = vstv %s462_s22  ;;  %v398_v57 = vstv %s397_s23 }
 0x1d4   :  { %v295_v8 = vmul.f32 %v294_v40, %v266_v4  ;;  %v345_v9 = vmul.f32 %v344_v41, %v266_v4  ;;  %v312_v16 = vmul.f32 %v311_v46, %v258_v5  ;;  %v362_v18 = vmul.f32 %v361_v47, %v258_v5  ;;  %v390_v46 = vld [vmem:[#allocation5 + $0x4] sm:$0xf] }
 0x1d6   :  { %v296_v14 = vadd.f32 %v295_v8, %v292_v6  ;;  %v346_v15 = vadd.f32 %v345_v9, %v342_v7  ;;  %v268_v19 = vpop.permute.xlu0 %267  ;;  %v272_v20 = vpop.permute.xlu1 %271  ;;  %v316_v29 = vadd.f32 %v315_v12, %v312_v16  ;;  %v366_v31 = vadd.f32 %v365_v13, %v362_v18 }
 0x1d7   :  { %v270_v23 = vsel %vm121_vm1, %v268_v19, 0.0  ;;  %v274_v24 = vsel %vm121_vm1, %v272_v20, 0.0 }
 0x1d8   :  { %v297_v25 = vadd.f32 %v296_v14, %v285_v10  ;;  %v347_v26 = vadd.f32 %v346_v15, %v335_v11  ;;  %v307_v27 = vmul.f32 %v306_v51, %v270_v23  ;;  %v357_v28 = vmul.f32 %v356_v55, %v270_v23 }
 0x1d9   :  { %v319_v30 = vmul.f32 %v318_v58, %v274_v24  ;;  %v369_v17 = vmul.f32 %v368_v59, %v274_v24 }
 0x1da   :  { %v308_v32 = vadd.f32 %v307_v27, %v304_v21  ;;  %v358_v33 = vadd.f32 %v357_v28, %v354_v22 }
 0x1db   :  { %v320_v36 = vadd.f32 %v319_v30, %v316_v29  ;;  %v370_v37 = vadd.f32 %v369_v17, %v366_v31 }
 0x1dc   :  { %v309_v34 = vadd.f32 %v308_v32, %v297_v25  ;;  %v359_v35 = vadd.f32 %v358_v33, %v347_v26 }
 0x1de   :  { %v321_v40 = vadd.f32 %v320_v36, %v309_v34  ;;  %v371_v41 = vadd.f32 %v370_v37, %v359_v35 }
 0x1e0   :  { %v374_v42 = vadd.f32 %v373_v38, %v371_v41  ;;  %v324_v43 = vadd.f32 %v323_v39, %v321_v40 }
 0x1e2   :  { %384 = vrot.lane.b32.xlu1 %v374_v42, %s601_s9  ;;  %376 = vrot.lane.b32.xlu0 %v324_v43, %s601_s9 }
 0x254   :  { %v385_v44 = vpop.permute.xlu1 %384  ;;  %v377_v45 = vpop.permute.xlu0 %376 }
 0x255   :  { %v387_v47 = vsel %vm121_vm1, %v385_v44, 0.0  ;;  %v379_v49 = vsel %vm121_vm1, %v377_v45, 0.0 }
 0x256   :  { %v388_v50 = vmax.f32 %v374_v42, %v387_v47  ;;  %v380_v51 = vmax.f32 %v324_v43, %v379_v49 }
 0x258   :  { %v391_v52 = vmul.f32 %v390_v46, %v388_v50  ;;  %v382_v53 = vmul.f32 %v381_v48, %v380_v51 }
 0x25a   :  { %v392_v54 = vadd.f32 %v391_v52, %v382_v53 }
 0x25c   :  { %v394_v55 = vsel %vm393_vm5, %v392_v54, 0.0 }
 0x25d   :  { %395 = vadd.xlane.f32.xlu0 %v394_v55 }
 0x2e6   :  { %v396_v58 = vpop.xlane.xlu0 %395 }
 0x2e7   :  { %v402_v59 = vadd.f32 %v401_v56, %v396_v58  ;;  %v399_v60 = vadd.f32 %v398_v57, %v396_v58 }
 0x2e9   :  { %v404_v61 = vrot.slane %v402_v59, 2 }
 0x2eb   :  { %v406_v62 = vmul.f32 %v404_v61, %v399_v60 }
 0x2ed   :  { %v463_v63 = vmul.f32 -1.442695, %v406_v62 }
 0x2ef   :  { %477 = vpow2.f32 %v463_v63 }
 0x2fc   :  { %v478_v0 = vpop.eup %477 }
 0x2fd   :  { %v410_v1 = vadd.f32 1.0, %v478_v0 }
 0x2ff   :  { %479 = vrcp.f32 %v410_v1 }
 0x30c   :  { %v480_v2 = vpop.eup %479 }
 0x30d   :  { %414 = vst.msk [vmem:[%s841_s7] sm:$0x3] %vm413_vm6, %v480_v2 }
 0x30e   :  { %419 = vsyncpa [#allocation3], 1 }
 0x30f   :  { %420 = vsyncpa [#allocation6], 1 }
 0x310   :  { %421 = vsyncpa [#allocation4], 1 }
 0x311   :  { %422 = vsyncpa [#allocation9], 1 }
 0x312   :  { %423 = vsyncpa [#allocation12], 1 }

</bundles_post_ra>
